<compile_context>
chip_gen: v5e
topology: v5e:2x2
jax: 0.10.0
libtpu: 0.0.40
codegen_flags: <defaults>
</compile_context>

<pallas_src>
import numpy as np
import jax
import jax.numpy as jnp
from jax import lax
from jax.experimental import pallas as pl
from jax.experimental.pallas import tpu as pltpu


# ---------------------------------------------------------------------------
# Fused kernel: proj_head on all 4 views + NT-Xent loss, all in VMEM.
#   inputs : y_all [4,B,D], w1 [D,D], b1 [1,D], w2 [D,D], b2 [1,D]
#   outputs: z_all [4,B,D] (the module's forward outputs), loss [1,1]
# ---------------------------------------------------------------------------
def _simclr_fused_kernel(y_ref, w1_ref, b1_ref, w2_ref, b2_ref, z_ref, loss_ref):
    V, B, D = y_ref.shape
    inv_T = 1.0 / 0.2

    # ---- proj_head on all views at once: relu(y @ W1 + b1) @ W2 + b2 -------
    y = y_ref[...].reshape(V * B, D)                       # tile-aligned reshape
    h = jnp.dot(y, w1_ref[...], preferred_element_type=jnp.float32)
    h = jnp.maximum(h + b1_ref[...], 0.0)                  # Linear -> ReLU
    z = jnp.dot(h, w2_ref[...], preferred_element_type=jnp.float32) + b2_ref[...]
    z_ref[...] = z.reshape(V, B, D).astype(z_ref.dtype)

    # ---- NT-Xent loss (matches torch loss_cal semantics, no eps, as in ref) -
    # row 1/||z|| for all 4B rows in one reduction (EUP rsqrt)
    inv_norm = lax.rsqrt(jnp.sum(z * z, axis=1, keepdims=True))       # [4B,1]

    # eye mask built once, shared by both similarity matrices
    eye = (lax.broadcasted_iota(jnp.int32, (B, B), 0)
           == lax.broadcasted_iota(jnp.int32, (B, B), 1))

    def nt_xent(a, b, inv_na, inv_nb):
        # contract dim 1 of both operands: MXU consumes b in its stored layout
        sim = lax.dot_general(a, b, (((1,), (1,)), ((), ())),
                              preferred_element_type=jnp.float32)     # [B,B]
        sim = jnp.exp(sim * (inv_na * inv_nb.T) * inv_T)
        pos = jnp.sum(jnp.where(eye, sim, 0.0), axis=1, keepdims=True)  # [B,1]
        denom = jnp.sum(sim, axis=1, keepdims=True) - pos
        return pos * pl.reciprocal(denom, approx=True)                  # [B,1]

    loss1 = nt_xent(z[0:B],       z[B:2 * B],     inv_norm[0:B],       inv_norm[B:2 * B])
    loss2 = nt_xent(z[2 * B:3 * B], z[3 * B:4 * B], inv_norm[2 * B:3 * B], inv_norm[3 * B:4 * B])

    loss = loss1 + 0.1 * loss2                                          # [B,1]
    mean_neg_log = -(jnp.sum(jnp.log(loss)) / B)
    loss_ref[...] = jnp.full((1, 1), 0.0, jnp.float32) + mean_neg_log


def simclr_forward_and_loss(y_all, w1, b1, w2, b2):
    """y_all: [4, B, D] stacked (y, y_aug, y_topo, y_topo_aug) embeddings."""
    V, B, D = y_all.shape
    full = lambda shape: pl.BlockSpec(shape, lambda i, _s=shape: (0,) * len(_s))
    z_all, loss = pl.pallas_call(
        _simclr_fused_kernel,
        out_shape=(jax.ShapeDtypeStruct((V, B, D), y_all.dtype),
                   jax.ShapeDtypeStruct((1, 1), jnp.float32)),
        grid=(1,),
        in_specs=[full((V, B, D)), full((D, D)), full((1, D)),
                  full((D, D)), full((1, D))],
        out_specs=(full((V, B, D)), full((1, 1))),
        compiler_params=pltpu.CompilerParams(
            dimension_semantics=("arbitrary",)),
    )(y_all, w1, b1, w2, b2)
    return z_all, loss[0, 0]


# ---------------------------------------------------------------------------
# Pure-JAX reference (for a correctness sanity check against the kernel).
# ---------------------------------------------------------------------------
def _reference(y_all, w1, b1, w2, b2):
    z = jnp.maximum(y_all @ w1 + b1, 0.0) @ w2 + b2
    x, xa, xt, xta = z[0], z[1], z[2], z[3]

    def nt(a, b):
        na = jnp.linalg.norm(a, axis=1)
        nb = jnp.linalg.norm(b, axis=1)
        sim = jnp.exp((a @ b.T) / (na[:, None] * nb[None, :]) / 0.2)
        pos = jnp.diag(sim)
        return pos / (sim.sum(axis=1) - pos)

    loss = nt(x, xa) + 0.1 * nt(xt, xta)
    return z, -jnp.mean(jnp.log(loss))


if __name__ == "__main__":
    # Lane-dense embedding_dim = hidden_dim * num_gc_layers = 128.
    hidden_dim, num_gc_layers = 32, 4
    D = hidden_dim * num_gc_layers        # 128 (full lane width)
    B = 8                                 # num_graphs (batch of graphs)

    key = jax.random.PRNGKey(0)
    k_y, k_ya, k_t, k_ta, k_w1, k_w2 = jax.random.split(key, 6)

    # Stand-in encoder / topoencoder outputs (see TODO(synk) above).
    y          = jax.random.normal(k_y,  (B, D), jnp.float32)
    y_aug      = jax.random.normal(k_ya, (B, D), jnp.float32)
    y_topo     = jax.random.normal(k_t,  (B, D), jnp.float32)
    y_topo_aug = jax.random.normal(k_ta, (B, D), jnp.float32)
    y_all = jnp.stack([y, y_aug, y_topo, y_topo_aug], axis=0)   # [4, B, D]

    # Deterministic init mirroring init_emb(): xavier_uniform_ weights, zero biases.
    bound = float(np.sqrt(6.0 / (D + D)))
    w1 = jax.random.uniform(k_w1, (D, D), jnp.float32, -bound, bound)  # [in, out]
    w2 = jax.random.uniform(k_w2, (D, D), jnp.float32, -bound, bound)  # [in, out]
    b1 = jnp.zeros((1, D), jnp.float32)
    b2 = jnp.zeros((1, D), jnp.float32)

    # One fused kernel: 4x proj_head forward + contrastive loss.
    z_all, loss = simclr_forward_and_loss(y_all, w1, b1, w2, b2)
    jax.block_until_ready((z_all, loss))

    # Sanity check vs pure-JAX reference (loose tol for approx reciprocal).
    z_ref, loss_ref_val = _reference(y_all, w1, b1, w2, b2)
    np.testing.assert_allclose(np.asarray(z_all), np.asarray(z_ref),
                               rtol=1e-3, atol=1e-3)
    np.testing.assert_allclose(float(loss), float(loss_ref_val),
                               rtol=2e-2, atol=1e-4)

    print("KERNEL_OK")
</pallas_src>

<mosaic_0001>
module attributes {stable_mosaic.version = 11 : i64} {
  func.func @_simclr_fused_kernel(%arg0: i32, %arg1: memref<4x8x128xf32, #tpu.memory_space<vmem>>, %arg2: memref<128x128xf32, #tpu.memory_space<vmem>>, %arg3: memref<1x128xf32, #tpu.memory_space<vmem>>, %arg4: memref<128x128xf32, #tpu.memory_space<vmem>>, %arg5: memref<1x128xf32, #tpu.memory_space<vmem>>, %arg6: memref<4x8x128xf32, #tpu.memory_space<vmem>>, %arg7: memref<1x1xf32, #tpu.memory_space<vmem>>) attributes {dimension_semantics = [#tpu.dimension_semantics<arbitrary>], iteration_bounds = array<i64: 1>, scalar_prefetch = 0 : i64, scratch_operands = 0 : i64, tpu.core_type = #tpu.core_type<tc>, window_params = [{pipeline_mode = #tpu.pipeline_mode<synchronous>, transform_indices = @transform_0, window_bounds = array<i64: 4, 8, 128>}, {pipeline_mode = #tpu.pipeline_mode<synchronous>, transform_indices = @transform_1, window_bounds = array<i64: 128, 128>}, {pipeline_mode = #tpu.pipeline_mode<synchronous>, transform_indices = @transform_2, window_bounds = array<i64: 1, 128>}, {pipeline_mode = #tpu.pipeline_mode<synchronous>, transform_indices = @transform_3, window_bounds = array<i64: 128, 128>}, {pipeline_mode = #tpu.pipeline_mode<synchronous>, transform_indices = @transform_4, window_bounds = array<i64: 1, 128>}, {pipeline_mode = #tpu.pipeline_mode<synchronous>, transform_indices = @transform_5, window_bounds = array<i64: 4, 8, 128>}, {pipeline_mode = #tpu.pipeline_mode<synchronous>, transform_indices = @transform_6, window_bounds = array<i64: 1, 1>}]} {
    %c0 = arith.constant 0 : index
    %c0_0 = arith.constant 0 : index
    %c0_1 = arith.constant 0 : index
    %0 = vector.load %arg1[%c0, %c0_0, %c0_1] : memref<4x8x128xf32, #tpu.memory_space<vmem>>, vector<4x8x128xf32>
    %1 = vector.shape_cast %0 : vector<4x8x128xf32> to vector<32x128xf32>
    %c0_2 = arith.constant 0 : index
    %c0_3 = arith.constant 0 : index
    %2 = vector.load %arg2[%c0_2, %c0_3] : memref<128x128xf32, #tpu.memory_space<vmem>>, vector<128x128xf32>
    %cst = arith.constant dense<0.000000e+00> : vector<32x128xf32>
    %3 = tpu.matmul %1, %2, %cst {dimension_numbers = #tpu.dot_dimension_numbers<[1], [0], [0], [1], [0, 0, 1, 1], [], []>} : vector<32x128xf32>, vector<128x128xf32>, vector<32x128xf32> -> vector<32x128xf32>
    %c0_4 = arith.constant 0 : index
    %c0_5 = arith.constant 0 : index
    %4 = vector.load %arg3[%c0_4, %c0_5] : memref<1x128xf32, #tpu.memory_space<vmem>>, vector<1x128xf32>
    %5 = vector.broadcast %4 : vector<1x128xf32> to vector<32x128xf32>
    %6 = arith.addf %3, %5 : vector<32x128xf32>
    %cst_6 = arith.constant 0.000000e+00 : f32
    %7 = vector.broadcast %cst_6 : f32 to vector<32x128xf32>
    %8 = arith.maximumf %6, %7 : vector<32x128xf32>
    %c0_7 = arith.constant 0 : index
    %c0_8 = arith.constant 0 : index
    %9 = vector.load %arg4[%c0_7, %c0_8] : memref<128x128xf32, #tpu.memory_space<vmem>>, vector<128x128xf32>
    %cst_9 = arith.constant dense<0.000000e+00> : vector<32x128xf32>
    %10 = tpu.matmul %8, %9, %cst_9 {dimension_numbers = #tpu.dot_dimension_numbers<[1], [0], [0], [1], [0, 0, 1, 1], [], []>} : vector<32x128xf32>, vector<128x128xf32>, vector<32x128xf32> -> vector<32x128xf32>
    %c0_10 = arith.constant 0 : index
    %c0_11 = arith.constant 0 : index
    %11 = vector.load %arg5[%c0_10, %c0_11] : memref<1x128xf32, #tpu.memory_space<vmem>>, vector<1x128xf32>
    %12 = vector.broadcast %11 : vector<1x128xf32> to vector<32x128xf32>
    %13 = arith.addf %10, %12 : vector<32x128xf32>
    %14 = vector.shape_cast %13 : vector<32x128xf32> to vector<4x8x128xf32>
    %c0_12 = arith.constant 0 : index
    %c0_13 = arith.constant 0 : index
    %c0_14 = arith.constant 0 : index
    %15 = vector.load %arg6[%c0_12, %c0_13, %c0_14] : memref<4x8x128xf32, #tpu.memory_space<vmem>>, vector<4x8x128xf32>
    tpu.vector_store %arg6[%c0_12, %c0_13, %c0_14], %14 {strides = array<i32>} : memref<4x8x128xf32, #tpu.memory_space<vmem>>, vector<4x8x128xf32>,
    %16 = arith.mulf %13, %13 : vector<32x128xf32>
    %cst_15 = arith.constant dense<0.000000e+00> : vector<32xf32>
    %17 = vector.multi_reduction <add>, %16, %cst_15 [1] : vector<32x128xf32> to vector<32xf32>
    %18 = vector.shape_cast %17 : vector<32xf32> to vector<32x1xf32>
    %19 = math.rsqrt %18 : vector<32x1xf32>
    %20 = tpu.iota {dimensions = array<i32: 0>} : vector<8x8xi32>
    %21 = tpu.iota {dimensions = array<i32: 1>} : vector<8x8xi32>
    %22 = arith.cmpi eq, %20, %21 : vector<8x8xi32>
    %23 = vector.extract_strided_slice %13 {offsets = [0, 0], sizes = [8, 128], strides = [1, 1]} : vector<32x128xf32> to vector<8x128xf32>
    %24 = vector.extract_strided_slice %13 {offsets = [8, 0], sizes = [8, 128], strides = [1, 1]} : vector<32x128xf32> to vector<8x128xf32>
    %25 = vector.extract_strided_slice %19 {offsets = [0, 0], sizes = [8, 1], strides = [1, 1]} : vector<32x1xf32> to vector<8x1xf32>
    %26 = vector.extract_strided_slice %19 {offsets = [8, 0], sizes = [8, 1], strides = [1, 1]} : vector<32x1xf32> to vector<8x1xf32>
    %cst_16 = arith.constant dense<0.000000e+00> : vector<8x8xf32>
    %27 = tpu.matmul %23, %24, %cst_16 {dimension_numbers = #tpu.dot_dimension_numbers<[1], [1], [0], [0], [0, 0, 1, 0], [], []>} : vector<8x128xf32>, vector<8x128xf32>, vector<8x8xf32> -> vector<8x8xf32>
    %28 = tpu.transpose %26, [1, 0] : vector<8x1xf32> -> vector<1x8xf32>
    %29 = vector.broadcast %25 : vector<8x1xf32> to vector<8x8xf32>
    %30 = vector.broadcast %28 : vector<1x8xf32> to vector<8x8xf32>
    %31 = arith.mulf %29, %30 : vector<8x8xf32>
    %32 = arith.mulf %27, %31 : vector<8x8xf32>
    %cst_17 = arith.constant 5.000000e+00 : f32
    %33 = vector.broadcast %cst_17 : f32 to vector<8x8xf32>
    %34 = arith.mulf %32, %33 : vector<8x8xf32>
    %35 = math.exp %34 : vector<8x8xf32>
    %cst_18 = arith.constant 0.000000e+00 : f32
    %36 = vector.broadcast %cst_18 : f32 to vector<8x8xf32>
    %37 = arith.select %22, %35, %36 : vector<8x8xi1>, vector<8x8xf32>
    %cst_19 = arith.constant dense<0.000000e+00> : vector<8xf32>
    %38 = vector.multi_reduction <add>, %37, %cst_19 [1] : vector<8x8xf32> to vector<8xf32>
    %39 = vector.shape_cast %38 : vector<8xf32> to vector<8x1xf32>
    %cst_20 = arith.constant dense<0.000000e+00> : vector<8xf32>
    %40 = vector.multi_reduction <add>, %35, %cst_20 [1] : vector<8x8xf32> to vector<8xf32>
    %41 = vector.shape_cast %40 : vector<8xf32> to vector<8x1xf32>
    %42 = arith.subf %41, %39 : vector<8x1xf32>
    %43 = tpu.reciprocal %42 {approx = true} : vector<8x1xf32> -> vector<8x1xf32>
    %44 = arith.mulf %39, %43 : vector<8x1xf32>
    %45 = vector.extract_strided_slice %13 {offsets = [16, 0], sizes = [8, 128], strides = [1, 1]} : vector<32x128xf32> to vector<8x128xf32>
    %46 = vector.extract_strided_slice %13 {offsets = [24, 0], sizes = [8, 128], strides = [1, 1]} : vector<32x128xf32> to vector<8x128xf32>
    %47 = vector.extract_strided_slice %19 {offsets = [16, 0], sizes = [8, 1], strides = [1, 1]} : vector<32x1xf32> to vector<8x1xf32>
    %48 = vector.extract_strided_slice %19 {offsets = [24, 0], sizes = [8, 1], strides = [1, 1]} : vector<32x1xf32> to vector<8x1xf32>
    %cst_21 = arith.constant dense<0.000000e+00> : vector<8x8xf32>
    %49 = tpu.matmul %45, %46, %cst_21 {dimension_numbers = #tpu.dot_dimension_numbers<[1], [1], [0], [0], [0, 0, 1, 0], [], []>} : vector<8x128xf32>, vector<8x128xf32>, vector<8x8xf32> -> vector<8x8xf32>
    %50 = tpu.transpose %48, [1, 0] : vector<8x1xf32> -> vector<1x8xf32>
    %51 = vector.broadcast %47 : vector<8x1xf32> to vector<8x8xf32>
    %52 = vector.broadcast %50 : vector<1x8xf32> to vector<8x8xf32>
    %53 = arith.mulf %51, %52 : vector<8x8xf32>
    %54 = arith.mulf %49, %53 : vector<8x8xf32>
    %cst_22 = arith.constant 5.000000e+00 : f32
    %55 = vector.broadcast %cst_22 : f32 to vector<8x8xf32>
    %56 = arith.mulf %54, %55 : vector<8x8xf32>
    %57 = math.exp %56 : vector<8x8xf32>
    %cst_23 = arith.constant 0.000000e+00 : f32
    %58 = vector.broadcast %cst_23 : f32 to vector<8x8xf32>
    %59 = arith.select %22, %57, %58 : vector<8x8xi1>, vector<8x8xf32>
    %cst_24 = arith.constant dense<0.000000e+00> : vector<8xf32>
    %60 = vector.multi_reduction <add>, %59, %cst_24 [1] : vector<8x8xf32> to vector<8xf32>
    %61 = vector.shape_cast %60 : vector<8xf32> to vector<8x1xf32>
    %cst_25 = arith.constant dense<0.000000e+00> : vector<8xf32>
    %62 = vector.multi_reduction <add>, %57, %cst_25 [1] : vector<8x8xf32> to vector<8xf32>
    %63 = vector.shape_cast %62 : vector<8xf32> to vector<8x1xf32>
    %64 = arith.subf %63, %61 : vector<8x1xf32>
    %65 = tpu.reciprocal %64 {approx = true} : vector<8x1xf32> -> vector<8x1xf32>
    %66 = arith.mulf %61, %65 : vector<8x1xf32>
    %cst_26 = arith.constant 1.000000e-01 : f32
    %67 = vector.broadcast %cst_26 : f32 to vector<8x1xf32>
    %68 = arith.mulf %67, %66 : vector<8x1xf32>
    %69 = arith.addf %44, %68 : vector<8x1xf32>
    %70 = math.log %69 : vector<8x1xf32>
    %71 = vector.shape_cast %70 : vector<8x1xf32> to vector<1x8x1xf32>
    %cst_27 = arith.constant dense<0.000000e+00> : vector<1xf32>
    %72 = vector.multi_reduction <add>, %71, %cst_27 [1, 2] : vector<1x8x1xf32> to vector<1xf32>
    %73 = vector.shape_cast %72 : vector<1xf32> to vector<1x1x1xf32>
    %74 = vector.extract %73[0, 0, 0] : f32 from vector<1x1x1xf32>
    %cst_28 = arith.constant 8.000000e+00 : f32
    %75 = arith.divf %74, %cst_28 : f32
    %cst_29 = arith.constant 0.000000e+00 : f32
    %76 = arith.subf %cst_29, %75 : f32
    %cst_30 = arith.constant 0.000000e+00 : f32
    %77 = vector.broadcast %cst_30 : f32 to vector<1x1xf32>
    %78 = vector.broadcast %76 : f32 to vector<1x1xf32>
    %79 = arith.addf %77, %78 : vector<1x1xf32>
    %c0_31 = arith.constant 0 : index
    %c0_32 = arith.constant 0 : index
    %80 = vector.load %arg7[%c0_31, %c0_32] : memref<1x1xf32, #tpu.memory_space<vmem>>, vector<1x1xf32>
    tpu.vector_store %arg7[%c0_31, %c0_32], %79 {strides = array<i32>} : memref<1x1xf32, #tpu.memory_space<vmem>>, vector<1x1xf32>,
    return
  }
  func.func @transform_0(%arg0: i32) -> (i32, i32, i32) {
    %c0_i32 = arith.constant 0 : i32
    %c0_i32_0 = arith.constant 0 : i32
    %c0_i32_1 = arith.constant 0 : i32
    %c0_i32_2 = arith.constant 0 : i32
    return %c0_i32, %c0_i32_0, %c0_i32_1 : i32, i32, i32
  }
  func.func @transform_1(%arg0: i32) -> (i32, i32) {
    %c0_i32 = arith.constant 0 : i32
    %c0_i32_0 = arith.constant 0 : i32
    %c0_i32_1 = arith.constant 0 : i32
    return %c0_i32, %c0_i32_0 : i32, i32
  }
  func.func @transform_2(%arg0: i32) -> (i32, i32) {
    %c0_i32 = arith.constant 0 : i32
    %c0_i32_0 = arith.constant 0 : i32
    %c0_i32_1 = arith.constant 0 : i32
    return %c0_i32, %c0_i32_0 : i32, i32
  }
  func.func @transform_3(%arg0: i32) -> (i32, i32) {
    %c0_i32 = arith.constant 0 : i32
    %c0_i32_0 = arith.constant 0 : i32
    %c0_i32_1 = arith.constant 0 : i32
    return %c0_i32, %c0_i32_0 : i32, i32
  }
  func.func @transform_4(%arg0: i32) -> (i32, i32) {
    %c0_i32 = arith.constant 0 : i32
    %c0_i32_0 = arith.constant 0 : i32
    %c0_i32_1 = arith.constant 0 : i32
    return %c0_i32, %c0_i32_0 : i32, i32
  }
  func.func @transform_5(%arg0: i32) -> (i32, i32, i32) {
    %c0_i32 = arith.constant 0 : i32
    %c0_i32_0 = arith.constant 0 : i32
    %c0_i32_1 = arith.constant 0 : i32
    %c0_i32_2 = arith.constant 0 : i32
    return %c0_i32, %c0_i32_0, %c0_i32_1 : i32, i32, i32
  }
  func.func @transform_6(%arg0: i32) -> (i32, i32) {
    %c0_i32 = arith.constant 0 : i32
    %c0_i32_0 = arith.constant 0 : i32
    %c0_i32_1 = arith.constant 0 : i32
    return %c0_i32, %c0_i32_0 : i32, i32
  }
}

</mosaic_0001>

<bundles_post_ra>
// kernel: tpu_custom_call.1
= control target key start
LH: loop header
LB: loop body
LE: loop exit
PB: predicated region body
PF: predicated region fallthrough
CT: control target
= control target key end

     0   :  { %12 = vsyncpa [#allocation3], 0  ;;  %s711_s0 = inlined_call_operand.hbm [shape: f32[4,8,128], index: 0, kind: input, shape index: {}]   ;;  %s712_s1 = inlined_call_operand.hbm [shape: f32[128,128], index: 1, kind: input, shape index: {}]   ;;  %s713_s2 = inlined_call_operand.vmem [shape: f32[1,128], index: 2, kind: input, shape index: {}]   ;;  %s714_s3 = inlined_call_operand.hbm [shape: f32[128,128], index: 3, kind: input, shape index: {}]   ;;  %s715_s4 = inlined_call_operand.vmem [shape: f32[1,128], index: 4, kind: input, shape index: {}]   ;;  %s716_s5 = inlined_call_operand.hbm [shape: f32[4,8,128], index: 5, kind: output, shape index: {0}]   ;;  %s717_s6 = inlined_call_operand.hbm [shape: f32[1,1], index: 6, kind: output, shape index: {1}]  }
   0x1   :  { %13 = vsyncpa [#allocation6], 0 }
   0x2   :  { %14 = vsyncpa [#allocation4], 0 }
   0x3   :  { %15 = vsyncpa [#allocation10], 0  ;;  %s33_s23 = sshll.u32 %s712_s1, 4  ;;  %s635_s24 = smov [#allocation5]   ;;  %s34_s23 = int_to_ptr.hbm [resolvable:$true] %s33_s23 }
   0x4   :  { %s35_s25 = sshll.u32 %s635_s24, 4  ;;  %s20_s28 = sshll.u32 %s711_s0, 4  ;;  %s36_s25 = int_to_ptr.vmem [resolvable:$true] %s35_s25  ;;  %s21_s28 = int_to_ptr.hbm [resolvable:$true] %s20_s28 }
   0x5   :  { %s636_s29 = smov 128   ;;  %s637_s30 = smov 8  }
   0x6   :  { %41 = dma.hbm_to_vmem [thread:$0]  %s34_s23, 2048, %s36_s25, [#allocation6], %s636_s29, %s636_s29, %s637_s30  }
   0x7   :  { %s638_s7 = smov [#allocation2]   ;;  %s48_s1 = sshll.u32 %s714_s3, 4  ;;  %s49_s1 = int_to_ptr.hbm [resolvable:$true] %s48_s1 }
   0x8   :  { %s22_s8 = sshll.u32 %s638_s7, 4  ;;  %s639_s0 = smov [#allocation7]   ;;  %s23_s8 = int_to_ptr.vmem [resolvable:$true] %s22_s8 }
   0x9   :  { %28 = dma.hbm_to_vmem [thread:$0]  %s21_s28, 512, %s23_s8, [#allocation3], %s636_s29, %s636_s29, %s637_s30  }
   0xa   :  { %s50_s11 = sshll.u32 %s639_s0, 4  ;;  %s51_s11 = int_to_ptr.vmem [resolvable:$true] %s50_s11 }
   0xb   :  { %56 = dma.hbm_to_vmem [thread:$0]  %s49_s1, 2048, %s51_s11, [#allocation6], %s636_s29, %s636_s29, %s637_s30  }
   0xc   :  { %627 = dma.done.wait [#allocation3], 512  }
   0xd   :  { %628 = vsyncadd [#allocation3], 4294966784 }
   0xe   :  { %629 = dma.done.wait [#allocation6], 4096  }
   0xf   :  { %630 = vsyncadd [#allocation6], 4294963200  ;;  %v90_v0 = vld [vmem:[#allocation5 + $0x78] sm:$0xff]  ;;  %v89_v1 = vld [vmem:[#allocation5 + $0x70] sm:$0xff]  ;;  %vm297_vm13 = vcmask 64512   ;;  %vm379_vm14 = vcmask 7168  }
  0x10   :  { %95 = vmatpush.msra.mxu0 %v90_v0  ;;  %440 = vmatpush.msra.mxu2 %v90_v0  ;;  %v88_v2 = vld [vmem:[#allocation5 + $0x68] sm:$0xff]  ;;  %v87_v3 = vld [vmem:[#allocation5 + $0x60] sm:$0xff]  ;;  %v86_v4 = vld [vmem:[#allocation5 + $0x58] sm:$0xff]  ;;  %s410_s17 = sshll.u32 %s716_s5, 4  ;;  %s642_s19 = smov [#allocation9]   ;;  %s411_s17 = int_to_ptr.hbm [resolvable:$true] %s410_s17 }
  0x11   :  { %v85_v5 = vld [vmem:[#allocation5 + $0x50] sm:$0xff]  ;;  %v143_v6 = vld [vmem:[#allocation7 + $0x78] sm:$0xff]  ;;  %v84_v8 = vld [vmem:[#allocation5 + $0x48] sm:$0xff]  ;;  %s422_s20 = sshll.u32 %s642_s19, 4  ;;  %s424_s24 = sshll.u32 %s717_s6, 4  ;;  %s423_s20 = int_to_ptr.vmem [resolvable:$true] %s422_s20  ;;  %s425_s24 = int_to_ptr.hbm [resolvable:$true] %s424_s24 }
  0x12   :  { %96 = vmatpush.msra.mxu0 %v89_v1  ;;  %441 = vmatpush.msra.mxu2 %v89_v1  ;;  %v142_v7 = vld [vmem:[#allocation7 + $0x70] sm:$0xff]  ;;  %v141_v9 = vld [vmem:[#allocation7 + $0x68] sm:$0xff]  ;;  %v83_v10 = vld [vmem:[#allocation5 + $0x40] sm:$0xff] }
  0x13   :  { %148 = vmatpush.msra.mxu1 %v143_v6  ;;  %456 = vmatpush.msra.mxu3 %v143_v6  ;;  %v140_v11 = vld [vmem:[#allocation7 + $0x60] sm:$0xff]  ;;  %v82_v12 = vld [vmem:[#allocation5 + $0x38] sm:$0xff]  ;;  %v81_v14 = vld [vmem:[#allocation5 + $0x30] sm:$0xff] }
  0x14   :  { %97 = vmatpush.msra.mxu0 %v88_v2  ;;  %442 = vmatpush.msra.mxu2 %v88_v2  ;;  %v139_v13 = vld [vmem:[#allocation7 + $0x58] sm:$0xff]  ;;  %v138_v15 = vld [vmem:[#allocation7 + $0x50] sm:$0xff]  ;;  %v80_v16 = vld [vmem:[#allocation5 + $0x28] sm:$0xff] }
  0x15   :  { %149 = vmatpush.msra.mxu1 %v142_v7  ;;  %457 = vmatpush.msra.mxu3 %v142_v7  ;;  %v137_v17 = vld [vmem:[#allocation7 + $0x48] sm:$0xff]  ;;  %v79_v18 = vld [vmem:[#allocation5 + $0x20] sm:$0xff]  ;;  %v78_v20 = vld [vmem:[#allocation5 + $0x18] sm:$0xff] }
  0x16   :  { %98 = vmatpush.msra.mxu0 %v87_v3  ;;  %443 = vmatpush.msra.mxu2 %v87_v3  ;;  %v136_v19 = vld [vmem:[#allocation7 + $0x40] sm:$0xff]  ;;  %v135_v21 = vld [vmem:[#allocation7 + $0x38] sm:$0xff]  ;;  %v77_v22 = vld [vmem:[#allocation5 + $0x10] sm:$0xff] }
  0x17   :  { %150 = vmatpush.msra.mxu1 %v141_v9  ;;  %458 = vmatpush.msra.mxu3 %v141_v9  ;;  %v134_v23 = vld [vmem:[#allocation7 + $0x30] sm:$0xff]  ;;  %v76_v24 = vld [vmem:[#allocation5 + $0x8] sm:$0xff]  ;;  %v75_v26 = vld [vmem:[#allocation5] sm:$0xff] }
  0x18   :  { %99 = vmatpush.msra.mxu0 %v86_v4  ;;  %444 = vmatpush.msra.mxu2 %v86_v4  ;;  %v133_v25 = vld [vmem:[#allocation7 + $0x28] sm:$0xff]  ;;  %v71_v27 = vld [vmem:[#allocation2] sm:$0xff]  ;;  %v73_v28 = vld [vmem:[#allocation2 + $0x10] sm:$0xff] }
  0x19   :  { %151 = vmatpush.msra.mxu1 %v140_v11  ;;  %459 = vmatpush.msra.mxu3 %v140_v11  ;;  %v132_v29 = vld [vmem:[#allocation7 + $0x20] sm:$0xff]  ;;  %v131_v30 = vld [vmem:[#allocation7 + $0x18] sm:$0xff]  ;;  %v72_v31 = vld [vmem:[#allocation2 + $0x8] sm:$0xff] }
  0x1a   :  { %100 = vmatpush.msra.mxu0 %v85_v5  ;;  %445 = vmatpush.msra.mxu2 %v85_v5  ;;  %v74_v32 = vld [vmem:[#allocation2 + $0x18] sm:$0xff]  ;;  %v130_v33 = vld [vmem:[#allocation7 + $0x10] sm:$0xff]  ;;  %v129_v34 = vld [vmem:[#allocation7 + $0x8] sm:$0xff] }
  0x1b   :  { %152 = vmatpush.msra.mxu1 %v139_v13  ;;  %460 = vmatpush.msra.mxu3 %v139_v13  ;;  %v128_v35 = vld [vmem:[#allocation7] sm:$0xff] }
  0x1c   :  { %101 = vmatpush.msra.mxu0 %v84_v8  ;;  %446 = vmatpush.msra.mxu2 %v84_v8  ;;  %v485_v36 = vld [vmem:[%s713_s2] ss:$0 sm:$0xff]  ;;  %s640_s2 = smov [#allocation8]  }
  0x1d   :  { %153 = vmatpush.msra.mxu1 %v138_v15  ;;  %461 = vmatpush.msra.mxu3 %v138_v15  ;;  %v486_v49 = vld [vmem:[%s715_s4] ss:$0 sm:$0xff]  ;;  %s408_s4 = sshll.u32 %s640_s2, 4  ;;  %s409_s4 = int_to_ptr.vmem [resolvable:$true] %s408_s4 }
  0x1e   :  { %102 = vmatpush.msra.mxu0 %v83_v10  ;;  %447 = vmatpush.msra.mxu2 %v83_v10 }
  0x1f   :  { %154 = vmatpush.msra.mxu1 %v137_v17  ;;  %462 = vmatpush.msra.mxu3 %v137_v17 }
  0x20   :  { %103 = vmatpush.msra.mxu0 %v82_v12  ;;  %448 = vmatpush.msra.mxu2 %v82_v12 }
  0x21   :  { %155 = vmatpush.msra.mxu1 %v136_v19  ;;  %463 = vmatpush.msra.mxu3 %v136_v19 }
  0x22   :  { %104 = vmatpush.msra.mxu0 %v81_v14  ;;  %449 = vmatpush.msra.mxu2 %v81_v14 }
  0x23   :  { %156 = vmatpush.msra.mxu1 %v135_v21  ;;  %464 = vmatpush.msra.mxu3 %v135_v21 }
  0x24   :  { %105 = vmatpush.msra.mxu0 %v80_v16  ;;  %450 = vmatpush.msra.mxu2 %v80_v16 }
  0x25   :  { %157 = vmatpush.msra.mxu1 %v134_v23  ;;  %465 = vmatpush.msra.mxu3 %v134_v23 }
  0x26   :  { %106 = vmatpush.msra.mxu0 %v79_v18  ;;  %451 = vmatpush.msra.mxu2 %v79_v18 }
  0x27   :  { %158 = vmatpush.msra.mxu1 %v133_v25  ;;  %466 = vmatpush.msra.mxu3 %v133_v25 }
  0x28   :  { %107 = vmatpush.msra.mxu0 %v78_v20  ;;  %452 = vmatpush.msra.mxu2 %v78_v20 }
  0x29   :  { %159 = vmatpush.msra.mxu1 %v132_v29  ;;  %467 = vmatpush.msra.mxu3 %v132_v29 }
  0x2a   :  { %108 = vmatpush.msra.mxu0 %v77_v22  ;;  %453 = vmatpush.msra.mxu2 %v77_v22 }
  0x2b   :  { %160 = vmatpush.msra.mxu1 %v131_v30  ;;  %468 = vmatpush.msra.mxu3 %v131_v30 }
  0x2c   :  { %109 = vmatpush.msra.mxu0 %v76_v24  ;;  %454 = vmatpush.msra.mxu2 %v76_v24 }
  0x2d   :  { %161 = vmatpush.msra.mxu1 %v130_v33  ;;  %469 = vmatpush.msra.mxu3 %v130_v33 }
  0x2e   :  { %110 = vmatpush.msra.mxu0 %v75_v26  ;;  %455 = vmatpush.msra.mxu2 %v75_v26 }
  0x2f   :  { %111 = vmatmul.f32.vlgmr.msra.gmra.mxu0 %v71_v27  ;;  %117 = vmatmul.f32.vlgmr.msra.gmra.mxu2 %v73_v28 }
  0x30   :  { %162 = vmatpush.msra.mxu1 %v129_v34  ;;  %470 = vmatpush.msra.mxu3 %v129_v34 }
  0x32   :  { %163 = vmatpush.msra.mxu1 %v128_v35  ;;  %471 = vmatpush.msra.mxu3 %v128_v35  ;;  %v233_v35 = vlaneseq }
  0x37   :  { %114 = vmatmul.f32.gmra.mxu0 %v72_v31  ;;  %120 = vmatmul.f32.gmra.mxu2 %v74_v32 }
  0xac   :  { %v112_v37 = vpop.f32.mrf.mxu0 }
  0xad   :  { %v113_v38 = vadd.f32 %v485_v36, %v112_v37 }
  0xaf   :  { %v124_v39 = vmax.f32 %v113_v38, 0.0 }
  0xb1   :  { %164 = vmatmul.f32.vlgmr.msra.gmra.mxu1 %v124_v39 }
  0xb2   :  { %v118_v40 = vpop.f32.mrf.mxu2 }
  0xb3   :  { %v119_v45 = vadd.f32 %v485_v36, %v118_v40 }
  0xb4   :  { %v115_v41 = vpop.f32.mrf.mxu0 }
  0xb5   :  { %v116_v42 = vadd.f32 %v485_v36, %v115_v41  ;;  %v126_v48 = vmax.f32 %v119_v45, 0.0  ;;  %v234_v41 = vshrl.u32 %v233_v35, 7 }
  0xb7   :  { %v125_v43 = vmax.f32 %v116_v42, 0.0  ;;  %v236_v42 = vand.u32 127, %v233_v35 }
  0xb9   :  { %167 = vmatmul.f32.gmra.mxu1 %v125_v43  ;;  %vm237_vm12 = vcmp.eq.s32.totalorder %v234_v41, %v236_v42 }
  0xba   :  { %v121_v44 = vpop.f32.mrf.mxu2 }
  0xbb   :  { %v122_v46 = vadd.f32 %v485_v36, %v121_v44 }
  0xbd   :  { %v127_v47 = vmax.f32 %v122_v46, 0.0 }
  0xbf   :  { %173 = vmatmul.f32.vlgmr.msra.gmra.mxu3 %v127_v47 }
  0xc1   :  { %170 = vmatmul.f32.gmra.mxu1 %v126_v48 }
 0x12e   :  { %v165_v50 = vpop.f32.mrf.mxu1 }
 0x12f   :  { %v166_v51 = vadd.f32 %v486_v49, %v165_v50 }
 0x131   :  { %177 = vst [vmem:[#allocation8] sm:$0xff] %v166_v51  ;;  %v181_v60 = vmul.f32 %v166_v51, %v166_v51 }
 0x136   :  { %v168_v52 = vpop.f32.mrf.mxu1 }
 0x137   :  { %v169_v53 = vadd.f32 %v486_v49, %v168_v52 }
 0x139   :  { %178 = vst [vmem:[#allocation8 + $0x8] sm:$0xff] %v169_v53  ;;  %253 = vmatpush.xpose.msrb.mxu2 %v169_v53  ;;  %v182_v61 = vmul.f32 %v169_v53, %v169_v53 }
 0x13c   :  { %254 = vmatmul.f32.vlgmr.msrb.gmra.mxu2 %v166_v51 }
 0x13e   :  { %v171_v54 = vpop.f32.mrf.mxu1 }
 0x13f   :  { %v172_v55 = vadd.f32 %v486_v49, %v171_v54 }
 0x141   :  { %179 = vst [vmem:[#allocation8 + $0x10] sm:$0xff] %v172_v55  ;;  %v183_v56 = vmul.f32 %v172_v55, %v172_v55 }
 0x142   :  { %v174_v57 = vpop.f32.mrf.mxu3 }
 0x143   :  { %v175_v58 = vadd.f32 %v486_v49, %v174_v57  ;;  %189 = vadd.xlane.f32.xlu1 %v183_v56 }
 0x145   :  { %180 = vst [vmem:[#allocation8 + $0x18] sm:$0xff] %v175_v58  ;;  %322 = vmatpush.xpose.msrb.mxu3 %v175_v58  ;;  %v184_v59 = vmul.f32 %v175_v58, %v175_v58 }
 0x146   :  { %416 = dma.vmem_to_hbm [thread:$0]  %s409_s4, 512, %s411_s17, [#allocation4], %s636_s29, %s636_s29, %s637_s30  }
 0x147   :  { %191 = vadd.xlane.f32.xlu0 %v184_v59 }
 0x148   :  { %323 = vmatmul.f32.vlgmr.msrb.gmra.mxu3 %v172_v55 }
 0x14b   :  { %185 = vadd.xlane.f32.xlu1 %v181_v60 }
 0x14f   :  { %187 = vadd.xlane.f32.xlu0 %v182_v61 }
 0x1b6   :  { %v190_v14 = vpop.xlane.xlu1 %189 }
 0x1b7   :  { %vm219_vm10 = vweird.f32 %v190_v14 }
 0x1ba   :  { %v192_v62 = vpop.xlane.xlu0 %191 }
 0x1bb   :  { %487 = vrsqrt.f32 %v192_v62  ;;  %vm229_vm4 = vweird.f32 %v192_v62 }
 0x1be   :  { %v186_v15 = vpop.xlane.xlu1 %185 }
 0x1bf   :  { %vm199_vm7 = vweird.f32 %v186_v15  ;;  %v255_v31 = vpop.f32.mrf.mxu2 }
 0x1c1   :  { %v488_v0 = vpop.eup %487 }
 0x1c2   :  { %v188_v63 = vpop.xlane.xlu0 %187  ;;  %v224_v1 = vmul.f32 %v488_v0, %v192_v62  ;;  %vm230_vm3 = vweird.f32 %v488_v0 }
 0x1c3   :  { %489 = vrsqrt.f32 %v188_v63  ;;  %vm209_vm1 = vweird.f32 %v188_v63  ;;  %vm231_vm5 = vmor %vm229_vm4, %vm230_vm3 }
 0x1c4   :  { %v225_v4 = vmul.f32 %v488_v0, %v224_v1  ;;  %491 = vrsqrt.f32 %v186_v15 }
 0x1c5   :  { %493 = vrsqrt.f32 %v190_v14 }
 0x1c6   :  { %v226_v7 = vmul.f32 0.5, %v225_v4 }
 0x1c8   :  { %v227_v10 = vsub.f32 1.5, %v226_v7 }
 0x1c9   :  { %v490_v2 = vpop.eup %489 }
 0x1ca   :  { %v204_v3 = vmul.f32 %v490_v2, %v188_v63  ;;  %vm210_vm0 = vweird.f32 %v490_v2  ;;  %v228_v12 = vmul.f32 %v488_v0, %v227_v10  ;;  %v492_v16 = vpop.eup %491 }
 0x1cb   :  { %vm211_vm2 = vmor %vm209_vm1, %vm210_vm0  ;;  %v194_v17 = vmul.f32 %v492_v16, %v186_v15  ;;  %v494_v19 = vpop.eup %493  ;;  %vm200_vm6 = vweird.f32 %v492_v16  ;;  %v324_v43 = vpop.f32.mrf.mxu3  ;;  %vm402_vm0 = vcmask 0  }
 0x1cc   :  { %v205_v5 = vmul.f32 %v490_v2, %v204_v3  ;;  %v232_v13 = vsel %vm231_vm5, %v488_v0, %v228_v12  ;;  %v214_v20 = vmul.f32 %v494_v19, %v190_v14  ;;  %vm201_vm8 = vmor %vm199_vm7, %vm200_vm6  ;;  %vm220_vm9 = vweird.f32 %v494_v19 }
 0x1cd   :  { %v195_v18 = vmul.f32 %v492_v16, %v194_v17  ;;  %vm221_vm11 = vmor %vm219_vm10, %vm220_vm9 }
 0x1ce   :  { %v206_v6 = vmul.f32 0.5, %v205_v5  ;;  %v215_v22 = vmul.f32 %v494_v19, %v214_v20 }
 0x1cf   :  { %v196_v21 = vmul.f32 0.5, %v195_v18 }
 0x1d0   :  { %v207_v8 = vsub.f32 1.5, %v206_v6  ;;  %v216_v24 = vmul.f32 0.5, %v215_v22  ;;  %v641_v6 = vmov 8.0  }
 0x1d1   :  { %v197_v23 = vsub.f32 1.5, %v196_v21 }
 0x1d2   :  { %v208_v9 = vmul.f32 %v490_v2, %v207_v8  ;;  %v217_v28 = vsub.f32 1.5, %v216_v24 }
 0x1d3   :  { %v198_v25 = vmul.f32 %v492_v16, %v197_v23 }
 0x1d4   :  { %v212_v11 = vsel %vm211_vm2, %v490_v2, %v208_v9  ;;  %v218_v33 = vmul.f32 %v494_v19, %v217_v28 }
 0x1d5   :  { %258 = vxpose.xlu2.b32.start.end [1/1] (short) (narrow) %v212_v11, 8  ;;  %v202_v29 = vsel %vm201_vm8, %v492_v16, %v198_v25 }
 0x1d6   :  { %v222_v39 = vsel %vm221_vm11, %v494_v19, %v218_v33 }
 0x1dd   :  { %327 = vxpose.xlu2.b32.start.end [1/1] (short) (narrow) %v232_v13, 8 }
 0x26e   :  { %v274_v26 = vpop.trf.xlu2 }
 0x26f   :  { %v290_v27 = vperm.slane %v274_v26, 0 }
 0x271   :  { %v291_v30 = vmul.f32 %v290_v27, %v202_v29 }
 0x273   :  { %v292_v32 = vmul.f32 %v291_v30, %v255_v31 }
 0x275   :  { %v293_v34 = vmul.f32 5.0, %v292_v32 }
 0x276   :  { %v343_v36 = vpop.trf.xlu2 }
 0x277   :  { %v294_v37 = vmul.f32 1.442695, %v293_v34  ;;  %v359_v38 = vperm.slane %v343_v36, 0 }
 0x279   :  { %495 = vpow2.f32 %v294_v37  ;;  %v360_v40 = vmul.f32 %v359_v38, %v222_v39 }
 0x27b   :  { %v361_v44 = vmul.f32 %v360_v40, %v324_v43 }
 0x27d   :  { %v362_v45 = vmul.f32 5.0, %v361_v44 }
 0x27f   :  { %v496_v46 = vpop.eup %495  ;;  %v363_v47 = vmul.f32 1.442695, %v362_v45 }
 0x280   :  { %v296_v48 = vsel %vm237_vm12, %v496_v46, 0.0  ;;  %v301_v54 = vsel %vm297_vm13, %v496_v46, 0.0 }
 0x281   :  { %497 = vpow2.f32 %v363_v47  ;;  %v298_v49 = vsel %vm297_vm13, %v296_v48, 0.0 }
 0x282   :  { %299 = vadd.xlane.f32.xlu2 %v298_v49 }
 0x287   :  { %v498_v50 = vpop.eup %497 }
 0x288   :  { %v369_v51 = vsel %vm297_vm13, %v498_v50, 0.0  ;;  %v365_v52 = vsel %vm237_vm12, %v498_v50, 0.0 }
 0x289   :  { %370 = vadd.xlane.f32.xlu1 %v369_v51  ;;  %v366_v53 = vsel %vm297_vm13, %v365_v52, 0.0 }
 0x28a   :  { %367 = vadd.xlane.f32.xlu0 %v366_v53 }
 0x292   :  { %302 = vadd.xlane.f32.xlu0 %v301_v54 }
 0x2f5   :  { %v300_v58 = vpop.xlane.xlu2 %299 }
 0x2fc   :  { %v371_v55 = vpop.xlane.xlu1 %370 }
 0x2fd   :  { %v368_v56 = vpop.xlane.xlu0 %367 }
 0x2fe   :  { %v372_v57 = vsub.f32 %v371_v55, %v368_v56 }
 0x300   :  { %499 = vrcp.f32 %v372_v57 }
 0x305   :  { %v303_v59 = vpop.xlane.xlu0 %302 }
 0x306   :  { %v304_v60 = vsub.f32 %v303_v59, %v300_v58  ;;  %v500_v61 = vpop.eup %499 }
 0x307   :  { %v374_v62 = vmul.f32 %v500_v61, %v368_v56 }
 0x308   :  { %501 = vrcp.f32 %v304_v60 }
 0x309   :  { %v375_v0 = vmul.f32 0.1, %v374_v62 }
 0x30e   :  { %v502_v63 = vpop.eup %501 }
 0x30f   :  { %v306_v1 = vmul.f32 %v502_v63, %v300_v58 }
 0x311   :  { %v376_v2 = vadd.f32 %v375_v0, %v306_v1 }
 0x313   :  { %503 = vlog2.f32 %v376_v2 }
 0x314   :  { %505 = vrcp.f32 %v641_v6 }
 0x319   :  { %v504_v3 = vpop.eup %503 }
 0x31a   :  { %v378_v4 = vmul.f32 0.6931472, %v504_v3  ;;  %v506_v7 = vpop.eup %505 }
 0x31b   :  { %v391_v8 = vmul.f32 8.0, %v506_v7  ;;  %vm395_vm15 = vweird.f32 %v506_v7 }
 0x31c   :  { %v380_v5 = vsel %vm379_vm14, %v378_v4, 0.0 }
 0x31d   :  { %381 = vadd.xlane.f32.xlu1 %v380_v5  ;;  %v392_v9 = vsub.f32 1.0, %v391_v8 }
 0x31f   :  { %v393_v13 = vmul.f32 %v506_v7, %v392_v9 }
 0x321   :  { %v394_v16 = vadd.f32 %v506_v7, %v393_v13 }
 0x323   :  { %v396_v19 = vsel %vm395_vm15, %v506_v7, %v394_v16 }
 0x390   :  { %v382_v10 = vpop.xlane.xlu1 %381 }
 0x391   :  { %v383_v11 = vrot.slane %v382_v10, 4 }
 0x393   :  { %v384_v12 = vadd.f32 %v383_v11, %v382_v10 }
 0x395   :  { %v385_v14 = vrot.slane %v384_v12, 2 }
 0x397   :  { %v386_v15 = vadd.f32 %v385_v14, %v384_v12 }
 0x399   :  { %v387_v17 = vrot.slane %v386_v15, 1 }
 0x39b   :  { %v388_v18 = vadd.f32 %v387_v17, %v386_v15 }
 0x39d   :  { %472 = vpush %v388_v18 }
 0x39e   :  { %474 = vpush %v396_v19 }
 0x3ce   :  { %s473_s5 = spop %472 }
 0x3cf   :  { %s475_s18 = spop %474 }
 0x3d0   :  { %s398_s21 = smul.f32 %s475_s18, %s473_s5 }
 0x3d2   :  { %s399_s25 = ssub.f32 0.0, %s398_s21 }
 0x3d4   :  { %v400_v20 = vstv %s399_s25 }
 0x3d5   :  { %403 = vst.msk [vmem:[#allocation9] sm:$0x1] %vm402_vm0, %v400_v20 }
 0x3d6   :  { %427 = dma.vmem_to_hbm [thread:$0]  %s423_s20, 16, %s425_s24, [#allocation10]  }
 0x3d7   :  { %631 = dma.done.wait [#allocation4], 512  }
 0x3d8   :  { %632 = vsyncadd [#allocation4], 4294966784 }
 0x3d9   :  { %633 = dma.done.wait [#allocation10], 16  }
 0x3da   :  { %634 = vsyncadd [#allocation10], 4294967280 }
 0x3db   :  { %436 = vsyncpa [#allocation3], 1 }
 0x3dc   :  { %437 = vsyncpa [#allocation6], 1 }
 0x3dd   :  { %438 = vsyncpa [#allocation4], 1 }
 0x3de   :  { %439 = vsyncpa [#allocation10], 1 }

</bundles_post_ra>
